<compile_context>
chip_gen: v7x
topology: tpu7x:2x2x1
jax: 0.10.0
libtpu: 0.0.40
codegen_flags: <defaults>
</compile_context>

<pallas_src>
import jax
import jax.numpy as jnp
from jax import lax
from jax.experimental import pallas as pl
from jax.experimental.pallas import tpu as pltpu


# ----------------------------- Pallas kernel --------------------------------
def _fused_double_conv_kernel(x_ref, m1_ref, m2_ref, b1_ref, b2_ref, o_ref):
    """Fused (conv3x3 + BN + ReLU) x 2, lane-dense batch-in-lanes layout.

    x_ref  : (H, 3*B*W*Cin) bf16  dy-expanded conv-1 input slab
             x[h, dy*(B*W*Cin) + b*(W*Cin) + w*Cin + ci] = xpad[b, h+dy-1, w, ci]
    m1_ref : (3*B*W*Cin, B*W*Cm) bf16  banded/dy/batch-block-diag conv-1 weights
    m2_ref : (3*B*W*Cm,  B*W*Co) bf16  banded/dy/batch-block-diag conv-2 weights
    b1_ref : (1, B*W*Cm) f32  BN-folded bias, tiled across batch & width
    b2_ref : (1, B*W*Co) f32
    o_ref  : (H, B*W*Co) f32  lane-dense output slab
    """
    H = o_ref.shape[0]

    # ---- conv1 + BN + ReLU : single MXU matmul, K = 3*B*W*Cin ----
    acc1 = jnp.dot(x_ref[...], m1_ref[...], preferred_element_type=jnp.float32)
    mid = jnp.maximum(acc1 + b1_ref[...], 0.0)            # (H, B*W*Cm) f32, in vregs

    # ---- in-register dy-shifted views of mid (sublane rolls on the XLU) ----
    row = lax.broadcasted_iota(jnp.int32, mid.shape, 0)
    up = jnp.where(row == 0, 0.0, pltpu.roll(mid, shift=1, axis=0))        # mid[h-1]
    dn = jnp.where(row == H - 1, 0.0, pltpu.roll(mid, shift=H - 1, axis=0))  # mid[h+1]
    z = jnp.concatenate([up, mid, dn], axis=1).astype(m2_ref.dtype)  # (H, 3*B*W*Cm)

    # ---- conv2 + BN + ReLU : single MXU matmul, K = 3*B*W*Cm ----
    acc2 = jnp.dot(z, m2_ref[...], preferred_element_type=jnp.float32)
    o_ref[...] = jnp.maximum(acc2 + b2_ref[...], 0.0).astype(o_ref.dtype)


def fused_double_conv(x_exp, m1, m2, b1_row, b2_row):
    """x_exp: (H, 3*B*W*Cin) bf16. Returns (H, B*W*Co) f32."""
    H = x_exp.shape[0]
    N2 = m2.shape[1]
    vmem = pl.BlockSpec(memory_space=pltpu.MemorySpace.VMEM)
    return pl.pallas_call(
        _fused_double_conv_kernel,
        out_shape=jax.ShapeDtypeStruct((H, N2), jnp.float32),
        in_specs=[vmem, vmem, vmem, vmem, vmem],
        out_specs=vmem,
    )(x_exp, m1, m2, b1_row, b2_row)


# ------------------------------- JAX glue ------------------------------------
def upsample_bilinear_2x_align_corners(x):
    """x: (B,H,W,C) -> (B,2H,2W,C), matches nn.Upsample(2,'bilinear',align_corners=True)."""
    B, H, W, C = x.shape
    H2, W2 = 2 * H, 2 * W
    ys = jnp.arange(H2, dtype=jnp.float32) * (H - 1) / (H2 - 1)
    xs = jnp.arange(W2, dtype=jnp.float32) * (W - 1) / (W2 - 1)
    y0 = jnp.floor(ys).astype(jnp.int32)
    y1 = jnp.minimum(y0 + 1, H - 1)
    wy = (ys - y0.astype(jnp.float32))[None, :, None, None]
    x0 = jnp.floor(xs).astype(jnp.int32)
    x1 = jnp.minimum(x0 + 1, W - 1)
    wx = (xs - x0.astype(jnp.float32))[None, None, :, None]

    rows = x[:, y0] * (1.0 - wy) + x[:, y1] * wy
    out = rows[:, :, x0] * (1.0 - wx) + rows[:, :, x1] * wx
    return out


def fold_bn(w, gamma, beta, mean, var, eps=1e-5):
    """Fold inference BatchNorm into conv weight (3,3,Cin,Co) and bias (Co,)."""
    scale = gamma / jnp.sqrt(var + eps)
    w_eff = w * scale[None, None, None, :]
    b_eff = beta - mean * scale
    return w_eff, b_eff


def _build_banded_weights(k_eff, W):
    """k_eff: (3,3,Cin,Co) BN-folded HWIO conv weights -> (3, W*Cin, W*Co).

    For each dy tap, M[w_in*Cin + ci, w_out*Co + co] = k_eff[dy, w_in-w_out+1, ci, co]
    inside the 3-wide band (zero elsewhere): the padded 3x3 conv along the
    width axis becomes a matmul on row-flattened (H, W*Cin) slabs.
    """
    _, _, Cin, Co = k_eff.shape
    dxi = jnp.arange(W)[:, None] - jnp.arange(W)[None, :] + 1      # (W_in, W_out)
    valid = (dxi >= 0) & (dxi <= 2)
    band = k_eff[:, jnp.clip(dxi, 0, 2), :, :]                     # (3, Win, Wout, Cin, Co)
    band = band * valid[None, :, :, None, None].astype(k_eff.dtype)
    band = jnp.transpose(band, (0, 1, 3, 2, 4))                    # (3, Win, Cin, Wout, Co)
    return band.reshape(3, W * Cin, W * Co)


def _batch_blockdiag(m3, B):
    """m3: (3, K, N) -> (3*B*K, B*N): per-dy block-diagonal over the batch so
    batch-in-lanes slabs contract without cross-image mixing, and the three dy
    taps collapse into a single matmul (rows are dy-major, then batch)."""
    _, K, N = m3.shape
    eye = jnp.eye(B, dtype=m3.dtype)
    mb = m3[:, None, :, None, :] * eye[None, :, None, :, None]     # (3, B, K, B, N)
    return mb.reshape(3 * B * K, B * N)


def precompute_operands(params, B, W, dtype=jnp.bfloat16):
    """Load-time weight prep: BN fold -> banded per-dy -> dy+batch expansion."""
    w1e, b1 = fold_bn(params["w1"], params["g1"], params["be1"],
                      params["m1"], params["v1"])
    w2e, b2 = fold_bn(params["w2"], params["g2"], params["be2"],
                      params["m2"], params["v2"])
    Cm = w1e.shape[-1]
    Co = w2e.shape[-1]
    m1 = _batch_blockdiag(_build_banded_weights(w1e, W), B).astype(dtype)
    m2 = _batch_blockdiag(_build_banded_weights(w2e, W), B).astype(dtype)
    b1_row = jnp.tile(b1, B * W).reshape(1, B * W * Cm).astype(jnp.float32)
    b2_row = jnp.tile(b2, B * W).reshape(1, B * W * Co).astype(jnp.float32)
    return {"m1": m1, "m2": m2, "b1": b1_row, "b2": b2_row}


def up_forward(x1_nchw, x2_nchw, ops):
    # NCHW -> NHWC; bilinear 2x upsample + pad-to-x2 + channel concat (tiny glue)
    x1 = jnp.transpose(x1_nchw, (0, 2, 3, 1))
    x2 = jnp.transpose(x2_nchw, (0, 2, 3, 1))
    x1 = upsample_bilinear_2x_align_corners(x1)
    diffY = x2.shape[1] - x1.shape[1]
    diffX = x2.shape[2] - x1.shape[2]
    x1 = jnp.pad(x1, ((0, 0),
                      (diffY // 2, diffY - diffY // 2),
                      (diffX // 2, diffX - diffX // 2),
                      (0, 0)))
    x = jnp.concatenate([x2, x1], axis=-1)               # (B, H, W, Cin), Cin=8
    B, H, W, Cin = x.shape

    # dy-expanded, batch-in-lanes conv-1 slab:
    #   X[h, dy*(B*W*Cin) + b*(W*Cin) + w*Cin + ci] = xpad[b, h+dy-1, w, ci]
    xr = jnp.pad(x.reshape(B, H, W * Cin), ((0, 0), (1, 1), (0, 0)))   # (B, H+2, W*Cin)
    x_exp = jnp.stack([xr[:, dy:dy + H] for dy in range(3)], axis=0)   # (3, B, H, W*Cin)
    x_exp = jnp.transpose(x_exp, (2, 0, 1, 3)).reshape(H, 3 * B * W * Cin)
    x_exp = x_exp.astype(ops["m1"].dtype)

    y_slab = fused_double_conv(x_exp, ops["m1"], ops["m2"],
                               ops["b1"], ops["b2"])      # (H, B*W*Co) f32
    Co = ops["b2"].shape[1] // (B * W)
    y = y_slab.reshape(H, B, W, Co)
    return jnp.transpose(y, (1, 3, 0, 2))                 # back to NCHW


def reference_forward(x1_nchw, x2_nchw, params):
    """Pure-JAX f32 reference (lax.conv) for the correctness check."""
    x1 = jnp.transpose(x1_nchw, (0, 2, 3, 1))
    x2 = jnp.transpose(x2_nchw, (0, 2, 3, 1))
    x1 = upsample_bilinear_2x_align_corners(x1)
    diffY = x2.shape[1] - x1.shape[1]
    diffX = x2.shape[2] - x1.shape[2]
    x1 = jnp.pad(x1, ((0, 0), (diffY // 2, diffY - diffY // 2),
                      (diffX // 2, diffX - diffX // 2), (0, 0)))
    x = jnp.concatenate([x2, x1], axis=-1)

    def block(x, w, g, be, m, v):
        y = lax.conv_general_dilated(
            x, w, window_strides=(1, 1), padding="SAME",
            dimension_numbers=("NHWC", "HWIO", "NHWC"))
        y = (y - m) / jnp.sqrt(v + 1e-5) * g + be
        return jnp.maximum(y, 0.0)

    y = block(x, params["w1"], params["g1"], params["be1"], params["m1"], params["v1"])
    y = block(y, params["w2"], params["g2"], params["be2"], params["m2"], params["v2"])
    return jnp.transpose(y, (0, 3, 1, 2))


# --------------------------------- main --------------------------------------
if __name__ == "__main__":
    key = jax.random.PRNGKey(0)
    ks = jax.random.split(key, 12)

    B = 2
    in_channels, out_channels = 8, 4          # Up(8, 4, bilinear=True)
    mid_channels = in_channels // 2           # 4
    H1, W1 = 8, 8                             # x1 spatial; x2 is 2x

    # Inputs mirroring PyTorch NCHW: x1 and x2 each have in_channels//2 channels
    x1 = jax.random.normal(ks[0], (B, in_channels // 2, H1, W1), jnp.float32)
    x2 = jax.random.normal(ks[1], (B, in_channels // 2, 2 * H1, 2 * W1), jnp.float32)

    # Deterministic parameter init (HWIO conv weights, inference BN stats)
    params = {
        "w1": 0.1 * jax.random.normal(ks[2], (3, 3, in_channels, mid_channels), jnp.float32),
        "g1": 1.0 + 0.1 * jax.random.normal(ks[3], (mid_channels,), jnp.float32),
        "be1": 0.1 * jax.random.normal(ks[4], (mid_channels,), jnp.float32),
        "m1": 0.1 * jax.random.normal(ks[5], (mid_channels,), jnp.float32),
        "v1": 1.0 + 0.1 * jax.random.uniform(ks[6], (mid_channels,), jnp.float32),
        "w2": 0.1 * jax.random.normal(ks[7], (3, 3, mid_channels, out_channels), jnp.float32),
        "g2": 1.0 + 0.1 * jax.random.normal(ks[8], (out_channels,), jnp.float32),
        "be2": 0.1 * jax.random.normal(ks[9], (out_channels,), jnp.float32),
        "m2": 0.1 * jax.random.normal(ks[10], (out_channels,), jnp.float32),
        "v2": 1.0 + 0.1 * jax.random.uniform(ks[11], (out_channels,), jnp.float32),
    }

    # One-time (load-time) weight preprocessing; W is the post-concat width.
    ops = precompute_operands(params, B, 2 * W1)

    fwd = jax.jit(up_forward)
    out = jax.block_until_ready(fwd(x1, x2, ops))
    ref = jax.block_until_ready(reference_forward(x1, x2, params))

    assert out.shape == (B, out_channels, 2 * H1, 2 * W1), out.shape
    max_err = float(jnp.max(jnp.abs(out - ref)))
    # bf16 matmul operands -> looser tolerance than the f32 version.
    assert jnp.allclose(out, ref, rtol=3e-2, atol=3e-2), max_err

    print("KERNEL_OK")
</pallas_src>

<mosaic_0001>
module attributes {stable_mosaic.version = 11 : i64} {
  func.func @_fused_double_conv_kernel(%arg0: memref<16x768xbf16, #tpu.memory_space<vmem>>, %arg1: memref<768x128xbf16, #tpu.memory_space<vmem>>, %arg2: memref<384x128xbf16, #tpu.memory_space<vmem>>, %arg3: memref<1x128xf32, #tpu.memory_space<vmem>>, %arg4: memref<1x128xf32, #tpu.memory_space<vmem>>, %arg5: memref<16x128xf32, #tpu.memory_space<vmem>>) attributes {dimension_semantics = [], scalar_prefetch = 0 : i64, scratch_operands = 0 : i64, tpu.core_type = #tpu.core_type<tc>} {
    %c0 = arith.constant 0 : index
    %c0_0 = arith.constant 0 : index
    %0 = vector.load %arg0[%c0, %c0_0] : memref<16x768xbf16, #tpu.memory_space<vmem>>, vector<16x768xbf16>
    %c0_1 = arith.constant 0 : index
    %c0_2 = arith.constant 0 : index
    %1 = vector.load %arg1[%c0_1, %c0_2] : memref<768x128xbf16, #tpu.memory_space<vmem>>, vector<768x128xbf16>
    %cst = arith.constant dense<0.000000e+00> : vector<16x128xf32>
    %2 = tpu.matmul %0, %1, %cst {dimension_numbers = #tpu.dot_dimension_numbers<[1], [0], [0], [1], [0, 0, 1, 1], [], []>} : vector<16x768xbf16>, vector<768x128xbf16>, vector<16x128xf32> -> vector<16x128xf32>
    %c0_3 = arith.constant 0 : index
    %c0_4 = arith.constant 0 : index
    %3 = vector.load %arg3[%c0_3, %c0_4] : memref<1x128xf32, #tpu.memory_space<vmem>>, vector<1x128xf32>
    %4 = vector.broadcast %3 : vector<1x128xf32> to vector<16x128xf32>
    %5 = arith.addf %2, %4 : vector<16x128xf32>
    %cst_5 = arith.constant 0.000000e+00 : f32
    %6 = vector.broadcast %cst_5 : f32 to vector<16x128xf32>
    %7 = arith.maximumf %5, %6 : vector<16x128xf32>
    %8 = tpu.iota {dimensions = array<i32: 0>} : vector<16x128xi32>
    %c0_i32 = arith.constant 0 : i32
    %9 = vector.broadcast %c0_i32 : i32 to vector<16x128xi32>
    %10 = arith.cmpi eq, %8, %9 : vector<16x128xi32>
    %c1_i32 = arith.constant 1 : i32
    %11 = tpu.dynamic_rotate %7 by %c1_i32 dim 0 : vector<16x128xf32>, i32 -> vector<16x128xf32>
    %cst_6 = arith.constant 0.000000e+00 : f32
    %12 = vector.broadcast %cst_6 : f32 to vector<16x128xf32>
    %13 = arith.select %10, %12, %11 : vector<16x128xi1>, vector<16x128xf32>
    %c15_i32 = arith.constant 15 : i32
    %14 = vector.broadcast %c15_i32 : i32 to vector<16x128xi32>
    %15 = arith.cmpi eq, %8, %14 : vector<16x128xi32>
    %c15_i32_7 = arith.constant 15 : i32
    %16 = tpu.dynamic_rotate %7 by %c15_i32_7 dim 0 : vector<16x128xf32>, i32 -> vector<16x128xf32>
    %cst_8 = arith.constant 0.000000e+00 : f32
    %17 = vector.broadcast %cst_8 : f32 to vector<16x128xf32>
    %18 = arith.select %15, %17, %16 : vector<16x128xi1>, vector<16x128xf32>
    %19 = tpu.concatenate %13, %7, %18 in 1 : vector<16x128xf32>, vector<16x128xf32>, vector<16x128xf32> -> vector<16x384xf32>
    %20 = arith.truncf %19 : vector<16x384xf32> to vector<16x384xbf16>
    %c0_9 = arith.constant 0 : index
    %c0_10 = arith.constant 0 : index
    %21 = vector.load %arg2[%c0_9, %c0_10] : memref<384x128xbf16, #tpu.memory_space<vmem>>, vector<384x128xbf16>
    %cst_11 = arith.constant dense<0.000000e+00> : vector<16x128xf32>
    %22 = tpu.matmul %20, %21, %cst_11 {dimension_numbers = #tpu.dot_dimension_numbers<[1], [0], [0], [1], [0, 0, 1, 1], [], []>} : vector<16x384xbf16>, vector<384x128xbf16>, vector<16x128xf32> -> vector<16x128xf32>
    %c0_12 = arith.constant 0 : index
    %c0_13 = arith.constant 0 : index
    %23 = vector.load %arg4[%c0_12, %c0_13] : memref<1x128xf32, #tpu.memory_space<vmem>>, vector<1x128xf32>
    %24 = vector.broadcast %23 : vector<1x128xf32> to vector<16x128xf32>
    %25 = arith.addf %22, %24 : vector<16x128xf32>
    %cst_14 = arith.constant 0.000000e+00 : f32
    %26 = vector.broadcast %cst_14 : f32 to vector<16x128xf32>
    %27 = arith.maximumf %25, %26 : vector<16x128xf32>
    %c0_15 = arith.constant 0 : index
    %c0_16 = arith.constant 0 : index
    %28 = vector.load %arg5[%c0_15, %c0_16] : memref<16x128xf32, #tpu.memory_space<vmem>>, vector<16x128xf32>
    tpu.vector_store %arg5[%c0_15, %c0_16], %27 {strides = array<i32>} : memref<16x128xf32, #tpu.memory_space<vmem>>, vector<16x128xf32>,
    return
  }
}

</mosaic_0001>

<bundles_post_ra>
// kernel: up_forward.1
= control target key start
LH: loop header
LB: loop body
LE: loop exit
PB: predicated region body
PF: predicated region fallthrough
CT: control target
= control target key end

     0   :  { %v1177_v55 = vmov 0.0   ;;  %vm1178_vm0 = vmmov 0   ;;  %vm1179_vm5 = vmmov 1   ;;  %s1456_s1 = inlined_call_operand.vmem [shape: bf16[768,128], index: 1, kind: input, shape index: {}]   ;;  %s1457_s0 = inlined_call_operand.vmem [shape: bf16[16,768], index: 0, kind: input, shape index: {}]   ;;  %s1458_s2 = inlined_call_operand.vmem [shape: bf16[384,128], index: 2, kind: input, shape index: {}]   ;;  %s1459_s3 = inlined_call_operand.vmem [shape: f32[1,128], index: 3, kind: input, shape index: {}]   ;;  %s1460_s4 = inlined_call_operand.vmem [shape: f32[1,128], index: 4, kind: input, shape index: {}]   ;;  %s1461_s5 = inlined_call_operand.vmem [shape: f32[16,128], index: 5, kind: output, shape index: {}]  }
   0x1   :  { %v1096_v0 = vld [vmem:[%s1456_s1 + $0x40] sm:$0xff]   ;;  %v1100_v4 = vld [vmem:[%s1456_s1 + $0x48] sm:$0xff]   ;;  %v1104_v8 = vld [vmem:[%s1456_s1 + $0x50] sm:$0xff]  }
   0x2   :  { %v1097_v1 = vld [vmem:[%s1456_s1] sm:$0xff]   ;;  %976 = vmatprep.subr.bf16.mxu0 %v1096_v0  ;;  %v1101_v5 = vld [vmem:[%s1456_s1 + $0x8] sm:$0xff]   ;;  %v1105_v9 = vld [vmem:[%s1456_s1 + $0x10] sm:$0xff]  }
   0x3   :  { %v1098_v2 = vld [vmem:[%s1456_s1 + $0xc0] sm:$0xff]   ;;  %977 = vmatpush3.bf16.msra.mxu0 %v1097_v1  ;;  %v1102_v6 = vld [vmem:[%s1456_s1 + $0xc8] sm:$0xff]   ;;  %v1106_v10 = vld [vmem:[%s1456_s1 + $0xd0] sm:$0xff]  }
   0x4   :  { %v1099_v3 = vld [vmem:[%s1456_s1 + $0x80] sm:$0xff]   ;;  %998 = vmatprep.subr.bf16.mxu1 %v1098_v2  ;;  %978 = vmatprep.subr.bf16.mxu0 %v1100_v4  ;;  %v1103_v7 = vld [vmem:[%s1456_s1 + $0x88] sm:$0xff]   ;;  %v1107_v11 = vld [vmem:[%s1456_s1 + $0x90] sm:$0xff]  }
   0x5   :  { %999 = vmatpush3.bf16.msra.mxu1 %v1099_v3  ;;  %v1108_v12 = vld [vmem:[%s1456_s1 + $0x58] sm:$0xff]   ;;  %v1112_v16 = vld [vmem:[%s1456_s1 + $0x60] sm:$0xff]   ;;  %v1116_v20 = vld [vmem:[%s1456_s1 + $0x68] sm:$0xff]  }
   0x6   :  { %1000 = vmatprep.subr.bf16.mxu1 %v1102_v6  ;;  %v1109_v13 = vld [vmem:[%s1456_s1 + $0x18] sm:$0xff]   ;;  %v1113_v17 = vld [vmem:[%s1456_s1 + $0x20] sm:$0xff]   ;;  %v1117_v21 = vld [vmem:[%s1456_s1 + $0x28] sm:$0xff]  }
   0x7   :  { %979 = vmatpush3.bf16.msra.mxu0 %v1101_v5  ;;  %v1110_v14 = vld [vmem:[%s1456_s1 + $0xd8] sm:$0xff]   ;;  %v1114_v18 = vld [vmem:[%s1456_s1 + $0xe0] sm:$0xff]   ;;  %v1118_v22 = vld [vmem:[%s1456_s1 + $0xe8] sm:$0xff]  }
   0x8   :  { %980 = vmatprep.subr.bf16.mxu0 %v1104_v8  ;;  %v1111_v15 = vld [vmem:[%s1456_s1 + $0x98] sm:$0xff]   ;;  %v1115_v19 = vld [vmem:[%s1456_s1 + $0xa0] sm:$0xff]   ;;  %v1119_v23 = vld [vmem:[%s1456_s1 + $0xa8] sm:$0xff]  }
   0x9   :  { %1001 = vmatpush3.bf16.msra.mxu1 %v1103_v7  ;;  %v1120_v24 = vld [vmem:[%s1456_s1 + $0x70] sm:$0xff]   ;;  %v1124_v28 = vld [vmem:[%s1456_s1 + $0x78] sm:$0xff]   ;;  %v1131_v34 = vld [vmem:[%s1456_s1 + $0x140] sm:$0xff]  }
   0xa   :  { %1002 = vmatprep.subr.bf16.mxu1 %v1106_v10  ;;  %v1121_v25 = vld [vmem:[%s1456_s1 + $0x30] sm:$0xff]   ;;  %v1125_v29 = vld [vmem:[%s1456_s1 + $0x38] sm:$0xff]   ;;  %v1132_v35 = vld [vmem:[%s1457_s0 + $0x8] ss:$24 sps:$4 sm:$0xff]  }
   0xb   :  { %981 = vmatpush3.bf16.msra.mxu0 %v1105_v9  ;;  %v1122_v26 = vld [vmem:[%s1456_s1 + $0xf0] sm:$0xff]   ;;  %v1126_v30 = vld [vmem:[%s1456_s1 + $0xf8] sm:$0xff]   ;;  %v1134_v36 = vld [vmem:[%s1457_s0 + $0xc] ss:$24 sps:$4 sm:$0xff]  }
   0xc   :  { %982 = vmatprep.subr.bf16.mxu0 %v1108_v12  ;;  %v1123_v27 = vld [vmem:[%s1456_s1 + $0xb0] sm:$0xff]   ;;  %v1127_v31 = vld [vmem:[%s1457_s0] ss:$24 sps:$4 sm:$0xff]   ;;  %v1129_v32 = vld [vmem:[%s1457_s0 + $0x4] ss:$24 sps:$4 sm:$0xff]   ;;  %521 = vmatprep.mubr.bf16.mxu1 %v1134_v36 }
   0xd   :  { %1003 = vmatpush3.bf16.msra.mxu1 %v1107_v11  ;;  %v1130_v33 = vld [vmem:[%s1456_s1 + $0xb8] sm:$0xff]   ;;  %480 = vmatprep.mubr.bf16.mxu0 %v1129_v32  ;;  %v1135_v37 = vld [vmem:[%s1456_s1 + $0x100] sm:$0xff]   ;;  %v1136_v38 = vld [vmem:[%s1456_s1 + $0x148] sm:$0xff]   ;;  %v573_v32 = vlaneseq }
   0xe   :  { %1004 = vmatprep.subr.bf16.mxu1 %v1110_v14  ;;  %v1137_v39 = vld [vmem:[%s1456_s1 + $0x108] sm:$0xff]   ;;  %v1138_v40 = vld [vmem:[%s1456_s1 + $0x150] sm:$0xff]   ;;  %v1140_v42 = vld [vmem:[%s1456_s1 + $0x158] sm:$0xff]  }
   0xf   :  { %983 = vmatpush3.bf16.msra.mxu0 %v1109_v13  ;;  %v1139_v41 = vld [vmem:[%s1456_s1 + $0x110] sm:$0xff]   ;;  %v1141_v43 = vld [vmem:[%s1456_s1 + $0x118] sm:$0xff]   ;;  %v1142_v44 = vld [vmem:[%s1456_s1 + $0x160] sm:$0xff]  }
  0x10   :  { %984 = vmatprep.subr.bf16.mxu0 %v1112_v16  ;;  %v1143_v45 = vld [vmem:[%s1456_s1 + $0x120] sm:$0xff]   ;;  %v1144_v46 = vld [vmem:[%s1456_s1 + $0x168] sm:$0xff]   ;;  %v1146_v49 = vld [vmem:[%s1456_s1 + $0x170] sm:$0xff]  }
  0x11   :  { %1005 = vmatpush3.bf16.msra.mxu1 %v1111_v15  ;;  %v1152_v47 = vld [vmem:[%s1457_s0 + $0x14] ss:$24 sps:$4 sm:$0xff]   ;;  %v1148_v51 = vld [vmem:[%s1456_s1 + $0x178] sm:$0xff]   ;;  %v1150_v53 = vld [vmem:[%s1457_s0 + $0x10] ss:$24 sps:$4 sm:$0xff]  }
  0x12   :  { %1006 = vmatprep.subr.bf16.mxu1 %v1114_v18  ;;  %v1145_v48 = vld [vmem:[%s1456_s1 + $0x128] sm:$0xff]   ;;  %v1147_v50 = vld [vmem:[%s1456_s1 + $0x130] sm:$0xff]   ;;  %v1149_v52 = vld [vmem:[%s1456_s1 + $0x138] sm:$0xff]  }
  0x13   :  { %985 = vmatpush3.bf16.msra.mxu0 %v1113_v17  ;;  %v1153_v54 = vld [vmem:[%s1458_s2 + $0x40] sm:$0xff]   ;;  %v1156_v58 = vld [vmem:[%s1458_s2 + $0x48] sm:$0xff]   ;;  %v1159_v61 = vld [vmem:[%s1458_s2 + $0x50] sm:$0xff]  }
  0x14   :  { %986 = vmatprep.subr.bf16.mxu0 %v1116_v20  ;;  %v1154_v56 = vld [vmem:[%s1458_s2] sm:$0xff]   ;;  %v1157_v59 = vld [vmem:[%s1458_s2 + $0x8] sm:$0xff]   ;;  %v1160_v62 = vld [vmem:[%s1458_s2 + $0x10] sm:$0xff]  }
  0x15   :  { %1007 = vmatpush3.bf16.msra.mxu1 %v1115_v19  ;;  %v1155_v57 = vld [vmem:[%s1458_s2 + $0x80] sm:$0xff]   ;;  %v1158_v60 = vld [vmem:[%s1458_s2 + $0x88] sm:$0xff]   ;;  %v1161_v63 = vld [vmem:[%s1458_s2 + $0x90] sm:$0xff]  }
  0x16   :  { %1008 = vmatprep.subr.bf16.mxu1 %v1118_v22  ;;  %v1162_v0 = vld [vmem:[%s1458_s2 + $0x58] sm:$0xff]   ;;  %v1165_v3 = vld [vmem:[%s1458_s2 + $0x60] sm:$0xff]   ;;  %v1168_v6 = vld [vmem:[%s1458_s2 + $0x68] sm:$0xff]  }
  0x17   :  { %987 = vmatpush3.bf16.msra.mxu0 %v1117_v21  ;;  %v1163_v1 = vld [vmem:[%s1458_s2 + $0x18] sm:$0xff]   ;;  %v1166_v4 = vld [vmem:[%s1458_s2 + $0x20] sm:$0xff]   ;;  %v1169_v7 = vld [vmem:[%s1458_s2 + $0x28] sm:$0xff]  }
  0x18   :  { %988 = vmatprep.subr.bf16.mxu0 %v1120_v24  ;;  %v1164_v2 = vld [vmem:[%s1458_s2 + $0x98] sm:$0xff]   ;;  %v1167_v5 = vld [vmem:[%s1458_s2 + $0xa0] sm:$0xff]   ;;  %v1170_v8 = vld [vmem:[%s1458_s2 + $0xa8] sm:$0xff]  }
  0x19   :  { %1009 = vmatpush3.bf16.msra.mxu1 %v1119_v23  ;;  %v1171_v9 = vld [vmem:[%s1458_s2 + $0x70] sm:$0xff]   ;;  %v1174_v12 = vld [vmem:[%s1458_s2 + $0x78] sm:$0xff]   ;;  %v886_v16 = vld [vmem:[%s1459_s3] ss:$0 sm:$0xff] }
  0x1a   :  { %1010 = vmatprep.subr.bf16.mxu1 %v1122_v26  ;;  %v1172_v10 = vld [vmem:[%s1458_s2 + $0x30] sm:$0xff]   ;;  %v1175_v13 = vld [vmem:[%s1458_s2 + $0x38] sm:$0xff]  }
  0x1b   :  { %989 = vmatpush3.bf16.msra.mxu0 %v1121_v25  ;;  %v1173_v11 = vld [vmem:[%s1458_s2 + $0xb0] sm:$0xff]   ;;  %v1176_v14 = vld [vmem:[%s1458_s2 + $0xb8] sm:$0xff]  }
  0x1c   :  { %990 = vmatprep.subr.bf16.mxu0 %v1124_v28 }
  0x1d   :  { %1011 = vmatpush3.bf16.msra.mxu1 %v1123_v27 }
  0x1e   :  { %1012 = vmatprep.subr.bf16.mxu1 %v1126_v30 }
  0x1f   :  { %991 = vmatpush3.bf16.msra.mxu0 %v1125_v29 }
  0x20   :  { %1020 = vmatprep.subr.bf16.mxu0 %v1131_v34 }
  0x21   :  { %1013 = vmatpush3.bf16.msra.mxu1 %v1130_v33 }
  0x22   :  { %481 = vmatmul.mubr.bf16.vlgmr.msra.gmra.mrb[0].mxu0 %v1127_v31  ;;  %1042 = vmatprep.subr.bf16.mxu1 %v1153_v54 }
  0x23   :  { %1021 = vmatpush3.bf16.msra.mxu0 %v1135_v37  ;;  %562 = vmatprep.mubr.bf16.mxu0 %v1152_v47 }
  0x24   :  { %522 = vmatmul.mubr.bf16.vlgmr.msra.gmra.mrb[0].mxu1 %v1132_v35  ;;  %1022 = vmatprep.subr.bf16.mxu0 %v1136_v38  ;;  %v574_v35 = vshrl.u32 %v573_v32, 7 }
  0x25   :  { %1043 = vmatpush3.bf16.msra.mxu1 %v1154_v56 }
  0x26   :  { %1044 = vmatprep.subr.bf16.mxu1 %v1156_v58  ;;  %vm974_vm1 = vcmp.ne.s32.totalorder %v574_v35, 0  ;;  %vm580_vm2 = vcmp.lt.s32.totalorder %v574_v35, 1  ;;  %vm589_vm3 = vcmp.lt.s32.totalorder %v574_v35, 7  ;;  %v941_v58 = vld [vmem:[%s1460_s4] ss:$0 sm:$0xff] }
  0x27   :  { %1023 = vmatpush3.bf16.msra.mxu0 %v1137_v39  ;;  %vm967_vm6 = vmpackc.low %vm1179_vm5, %vm974_vm1 }
  0x28   :  { %1024 = vmatprep.subr.bf16.mxu0 %v1138_v40 }
  0x29   :  { %1045 = vmatpush3.bf16.msra.mxu1 %v1157_v59 }
  0x2a   :  { %1046 = vmatprep.subr.bf16.mxu1 %v1159_v61 }
  0x2b   :  { %1025 = vmatpush3.bf16.msra.mxu0 %v1139_v41  ;;  %v575_v41 = vadd.s32 8, %v574_v35 }
  0x2c   :  { %1026 = vmatprep.subr.bf16.mxu0 %v1140_v42 }
  0x2d   :  { %1047 = vmatpush3.bf16.msra.mxu1 %v1160_v62  ;;  %vm975_vm4 = vcmp.ne.s32.totalorder %v575_v41, 15 }
  0x2e   :  { %1048 = vmatprep.subr.bf16.mxu1 %v1162_v0  ;;  %vm971_vm7 = vmpackc.low %vm975_vm4, %vm1179_vm5 }
  0x2f   :  { %1027 = vmatpush3.bf16.msra.mxu0 %v1141_v43 }
  0x30   :  { %1028 = vmatprep.subr.bf16.mxu0 %v1142_v44 }
  0x31   :  { %1049 = vmatpush3.bf16.msra.mxu1 %v1163_v1 }
  0x32   :  { %1050 = vmatprep.subr.bf16.mxu1 %v1165_v3 }
  0x33   :  { %1029 = vmatpush3.bf16.msra.mxu0 %v1143_v45 }
  0x34   :  { %1030 = vmatprep.subr.bf16.mxu0 %v1144_v46 }
  0x35   :  { %1051 = vmatpush3.bf16.msra.mxu1 %v1166_v4 }
  0x36   :  { %1052 = vmatprep.subr.bf16.mxu1 %v1168_v6 }
  0x37   :  { %1031 = vmatpush3.bf16.msra.mxu0 %v1145_v48 }
  0x38   :  { %1032 = vmatprep.subr.bf16.mxu0 %v1146_v49 }
  0x39   :  { %1053 = vmatpush3.bf16.msra.mxu1 %v1169_v7 }
  0x3a   :  { %1054 = vmatprep.subr.bf16.mxu1 %v1171_v9 }
  0x3b   :  { %1033 = vmatpush3.bf16.msra.mxu0 %v1147_v50 }
  0x3c   :  { %1034 = vmatprep.subr.bf16.mxu0 %v1148_v51 }
  0x3d   :  { %1055 = vmatpush3.bf16.msra.mxu1 %v1172_v10 }
  0x3e   :  { %1056 = vmatprep.subr.bf16.mxu1 %v1174_v12 }
  0x3f   :  { %1035 = vmatpush3.bf16.msra.mxu0 %v1149_v52 }
  0x40   :  { %1073 = vmatprep.subr.bf16.mxu0 %v1177_v55 }
  0x41   :  { %1057 = vmatpush3.bf16.msra.mxu1 %v1175_v13 }
  0x42   :  { %563 = vmatmul.mubr.bf16.vlgmr.msra.gmra.mrb[4].mxu0 %v1150_v53 }
  0x43   :  { %1074 = vmatpush3.bf16.msra.mxu0 %v1155_v57  ;;  %1089 = vmatprep.mubr.msk.bf16.mxu0 %vm1178_vm0, %v1177_v55 }
  0x44   :  { %1075 = vmatprep.subr.bf16.mxu0 %v1177_v55 }
  0x47   :  { %1076 = vmatpush3.bf16.msra.mxu0 %v1158_v60 }
  0x48   :  { %1077 = vmatprep.subr.bf16.mxu0 %v1177_v55 }
  0x4b   :  { %1078 = vmatpush3.bf16.msra.mxu0 %v1161_v63 }
  0x4c   :  { %1079 = vmatprep.subr.bf16.mxu0 %v1177_v55 }
  0x4f   :  { %1080 = vmatpush3.bf16.msra.mxu0 %v1164_v2 }
  0x50   :  { %1081 = vmatprep.subr.bf16.mxu0 %v1177_v55 }
  0x53   :  { %1082 = vmatpush3.bf16.msra.mxu0 %v1167_v5 }
  0x54   :  { %1083 = vmatprep.subr.bf16.mxu0 %v1177_v55 }
  0x57   :  { %1084 = vmatpush3.bf16.msra.mxu0 %v1170_v8 }
  0x58   :  { %1085 = vmatprep.subr.bf16.mxu0 %v1177_v55 }
  0x5b   :  { %1086 = vmatpush3.bf16.msra.mxu0 %v1173_v11 }
  0x5c   :  { %1087 = vmatprep.subr.bf16.mxu0 %v1177_v55 }
  0x5f   :  { %1088 = vmatpush3.bf16.msra.mxu0 %v1176_v14 }
  0xf5   :  { %v992_v15 = vpop.f32.mrb[0].mxu0 }
  0xf6   :  { %v993_v17 = vpop.f32.mrb[1].mxu0 }
  0xf7   :  { %v994_v18 = vadd.f32 %v993_v17, %v992_v15  ;;  %v995_v19 = vpop.f32.mrb[2].mxu0  ;;  %v1014_v20 = vpop.f32.mrb[0].mxu1 }
  0xf8   :  { %v996_v21 = vpop.f32.mrb[3].mxu0  ;;  %v1015_v24 = vpop.f32.mrb[1].mxu1 }
  0xf9   :  { %v483_v22 = vadd.f32 %v994_v18, %v886_v16  ;;  %v997_v23 = vadd.f32 %v996_v21, %v995_v19  ;;  %v1016_v25 = vadd.f32 %v1015_v24, %v1014_v20  ;;  %v1017_v26 = vpop.f32.mrb[2].mxu1 }
  0xfa   :  { %v1018_v28 = vpop.f32.mrb[3].mxu1 }
  0xfb   :  { %v486_v27 = vadd.f32 %v997_v23, %v886_v16  ;;  %v524_v29 = vadd.f32 %v1016_v25, %v483_v22  ;;  %v1019_v30 = vadd.f32 %v1018_v28, %v1017_v26 }
  0xfd   :  { %v527_v31 = vadd.f32 %v1019_v30, %v486_v27 }
 0x115   :  { %v1036_v33 = vpop.f32.mrb[4].mxu0 }
 0x116   :  { %v1037_v34 = vpop.f32.mrb[5].mxu0 }
 0x117   :  { %v1038_v36 = vadd.f32 %v1037_v34, %v1036_v33  ;;  %v1039_v37 = vpop.f32.mrb[6].mxu0 }
 0x118   :  { %v1040_v38 = vpop.f32.mrb[7].mxu0 }
 0x119   :  { %v565_v39 = vadd.f32 %v1038_v36, %v524_v29  ;;  %v1041_v40 = vadd.f32 %v1040_v38, %v1039_v37 }
 0x11b   :  { %v571_v42 = vmax.f32 %v565_v39, 0.0  ;;  %v568_v43 = vadd.f32 %v1041_v40, %v527_v31 }
 0x11d   :  { %v572_v44 = vmax.f32 %v568_v43, 0.0  ;;  %v578_v45 = vrot.slane %v571_v42, 7  ;;  %v587_v46 = vrot.slane %v571_v42, 1 }
 0x11f   :  { %v579_v47 = vrot.slane %v572_v44, 7  ;;  %v588_v48 = vrot.slane %v572_v44, 1  ;;  %v595_v49 = vpack.c.bf16 %v572_v44, %v571_v42 }
 0x121   :  { %v581_v50 = vsel %vm580_vm2, %v578_v45, %v579_v47  ;;  %v582_v51 = vsel %vm580_vm2, %v579_v47, %v578_v45  ;;  %v590_v52 = vsel %vm589_vm3, %v587_v46, %v588_v48  ;;  %v591_v53 = vsel %vm589_vm3, %v588_v48, %v587_v46  ;;  %828 = vmatprep.mubr.bf16.mxu1 %v595_v49 }
 0x122   :  { %v968_v54 = vpack.c.bf16 %v581_v50, %v582_v51  ;;  %v972_v55 = vpack.c.bf16 %v591_v53, %v590_v52 }
 0x124   :  { %969 = vmatmul.mubr.msk.bf16.vlgmr.msra.gmra.mrb[4].mxu1 %vm967_vm6, %v968_v54  ;;  %1090 = vmatmul.mubr.msk.bf16.vlgmr.msra.gmra.mrb[8].mxu0 %vm971_vm7, %v972_v55 }
 0x1f7   :  { %v1058_v56 = vpop.f32.mrb[4].mxu1  ;;  %v871_v57 = vpop.f32.mrb[8].mxu0 }
 0x1f8   :  { %v1059_v59 = vpop.f32.mrb[5].mxu1  ;;  %v1091_v60 = vpop.f32.mrb[9].mxu0 }
 0x1f9   :  { %v1060_v61 = vadd.f32 %v1059_v59, %v1058_v56  ;;  %v1061_v62 = vpop.f32.mrb[6].mxu1  ;;  %v874_v63 = vpop.f32.mrb[10].mxu0 }
 0x1fa   :  { %v1062_v0 = vpop.f32.mrb[7].mxu1  ;;  %v1092_v1 = vpop.f32.mrb[11].mxu0 }
 0x1fb   :  { %v831_v2 = vadd.f32 %v1060_v61, %v941_v58  ;;  %v1063_v3 = vadd.f32 %v1062_v0, %v1061_v62 }
 0x1fd   :  { %v872_v4 = vadd.f32 %v871_v57, %v831_v2  ;;  %v834_v5 = vadd.f32 %v1063_v3, %v941_v58 }
 0x1ff   :  { %v878_v6 = vmax.f32 %v872_v4, 0.0  ;;  %v875_v7 = vadd.f32 %v874_v63, %v834_v5 }
 0x201   :  { %880 = vst [vmem:[%s1461_s5] sm:$0xff] %v878_v6  ;;  %v879_v8 = vmax.f32 %v875_v7, 0.0 }
 0x203   :  { %881 = vst [vmem:[%s1461_s5 + $0x8] sm:$0xff] %v879_v8 }

</bundles_post_ra>
